<compile_context>
chip_gen: v6e
topology: v6e:2x2x1
jax: 0.10.0
libtpu: 0.0.40
codegen_flags: <defaults>
</compile_context>

<pallas_src>
import jax
import jax.numpy as jnp
import numpy as np
from jax.experimental import pallas as pl
from jax.experimental.pallas import tpu as pltpu


# ----------------------------------------------------------------------------
# Host-built (numpy) mask / coefficient planes over the flat (C, N*H*W) layout.
# ----------------------------------------------------------------------------
def _spatial_constants(N, C, H, W):
    L = N * H * W
    p = np.arange(L)
    j = p % W                      # column inside the image
    i = (p % (H * W)) // W         # row inside the image

    # pad=1 zero masks for the 9 conv taps evaluated on the pooled (even
    # position) grid; rows k*C .. k*C+C-1 belong to tap k = (dy+1)*3+(dx+1).
    taps = []
    for dy in (-1, 0, 1):
        for dx in (-1, 0, 1):
            ok = ((i + 2 * dy >= 0) & (i + 2 * dy < H)
                  & (j + 2 * dx >= 0) & (j + 2 * dx < W))
            taps.append(np.repeat(ok[None, :].astype(np.float32), C, axis=0))
    conv_mask = np.concatenate(taps, axis=0)               # (9*C, L)

    # Bilinear 2x upsample (align_corners=False), separable.  The low-res
    # sample b sits at even index 2b; coefficient rows correspond to reads at
    # offsets [0, -1, -2, +1] (columns) resp. [0, -W, -2W, +W] (rows).
    def coefs(idx, n):
        even = (idx % 2) == 0
        c0 = np.where(even, 0.75 + 0.25 * (idx == 0), 0.0)
        cm1 = np.where(~even, 0.75 + 0.25 * (idx == n - 1), 0.0)
        cm2 = np.where(even & (idx >= 2), 0.25, 0.0)
        cp1 = np.where(~even & (idx <= n - 3), 0.25, 0.0)
        return np.stack([c0, cm1, cm2, cp1], axis=0).astype(np.float32)

    up_col = coefs(j, W)                                   # (4, L)
    up_row = coefs(i, H)                                   # (4, L)
    return jnp.asarray(conv_mask), jnp.asarray(up_col), jnp.asarray(up_row)


# ----------------------------------------------------------------------------
# Wrapper + kernel (single grid-less pallas_call, everything resident in VMEM).
# ----------------------------------------------------------------------------
def res_unit_pallas(x, w, b):
    N, C, H, W = x.shape
    assert H % 2 == 0 and W % 2 == 0, "MaxPool2d(2,2) needs even H, W"
    L = N * H * W
    f32 = jnp.float32

    conv_mask, up_col, up_row = _spatial_constants(N, C, H, W)

    # Conv2d weights (O, I, 3, 3) -> (O, 9*I) with column order k*C + i,
    # k = ky*3 + kx, matching the sublane stacking of the shifted planes.
    w2 = jnp.transpose(w.astype(f32), (2, 3, 0, 1)).reshape(9, C, C)
    w2 = jnp.transpose(w2, (1, 0, 2)).reshape(C, 9 * C)
    b_col = b.astype(f32).reshape(C, 1)

    # Batch folded onto the lane axis: (N, C, H, W) -> (C, N*H*W).
    x_flat = jnp.transpose(x, (1, 0, 2, 3)).reshape(C, L)

    def kernel(x_ref, w_ref, b_ref, cmask_ref, upc_ref, upr_ref, o_ref):
        xv = x_ref[...].astype(f32)                        # (C, L)

        def ahead(v, s):
            # out[..., p] = v[..., p + s] (circular; wrapped lanes only land
            # where masks / coefficients are zero or at unused odd positions).
            if s % L == 0:
                return v
            return pltpu.roll(v, shift=(-s) % L, axis=1)

        # --- MaxPool2d(2, 2): valid at even (i, j) only ---------------------
        hm = jnp.maximum(xv, ahead(xv, 1))                 # columns j, j+1
        m = jnp.maximum(hm, ahead(hm, W))                  # rows    i, i+1

        # --- Conv2d(C, C, 3, padding=1) on the pooled grid ------------------
        # 9 lane rolls, one fused boundary mask (the pad=1 zeros), then a
        # single MXU matmul (C, 9C) @ (9C, L) for taps + channel contraction.
        g = jnp.concatenate(
            [ahead(m, 2 * dy * W + 2 * dx)
             for dy in (-1, 0, 1) for dx in (-1, 0, 1)], axis=0)
        g = g * cmask_ref[...]                             # (9*C, L)
        y = jnp.dot(w_ref[...], g, preferred_element_type=f32) + b_ref[...]

        # --- Bilinear 2x upsample (align_corners=False), separable ----------
        uc = upc_ref[...]                                  # (4, L) col coefs
        u = (uc[0:1] * y + uc[1:2] * ahead(y, -1)
             + uc[2:3] * ahead(y, -2) + uc[3:4] * ahead(y, 1))
        ur = upr_ref[...]                                  # (4, L) row coefs
        up = (ur[0:1] * u + ur[1:2] * ahead(u, -W)
              + ur[2:3] * ahead(u, -2 * W) + ur[3:4] * ahead(u, W))

        # --- Sigmoid gate applied to the identity ---------------------------
        o_ref[...] = (xv * jax.nn.sigmoid(up)).astype(o_ref.dtype)

    cost = pl.CostEstimate(
        flops=2 * C * (9 * C) * L + 64 * C * L,
        transcendentals=C * L,
        bytes_accessed=4 * (2 * C * L + (9 * C + 8) * L + 9 * C * C + C),
    )

    out = pl.pallas_call(
        kernel,
        out_shape=jax.ShapeDtypeStruct((C, L), x.dtype),
        cost_estimate=cost,
    )(x_flat, w2, b_col, conv_mask, up_col, up_row)

    return jnp.transpose(out.reshape(C, N, H, W), (1, 0, 2, 3))


# ----------------------------------------------------------------------------
# Pure-JAX reference mirroring the PyTorch forward.
# ----------------------------------------------------------------------------
def res_unit_reference(x, w, b):
    N, C, H, W = x.shape
    p = x.reshape(N, C, H // 2, 2, W // 2, 2).max(axis=(3, 5))      # MaxPool2d(2,2)
    y = jax.lax.conv_general_dilated(
        p, w, window_strides=(1, 1), padding=((1, 1), (1, 1)),
        dimension_numbers=("NCHW", "OIHW", "NCHW"))
    y = y + b[None, :, None, None]
    up = jax.image.resize(y, (N, C, H, W), method="bilinear")       # align_corners=False
    return x * jax.nn.sigmoid(up)


if __name__ == "__main__":
    key = jax.random.PRNGKey(0)
    kx, kw, kb = jax.random.split(key, 3)
    N, C, H, W = 2, 4, 16, 16
    x = jax.random.normal(kx, (N, C, H, W), dtype=jnp.float32)
    # Deterministic synthetic parameters for Conv2d(channel, channel, 3, padding=1)
    w = jax.random.uniform(kw, (C, C, 3, 3), jnp.float32, minval=-0.3, maxval=0.3)
    b = jax.random.uniform(kb, (C,), jnp.float32, minval=-0.1, maxval=0.1)

    run = jax.jit(res_unit_pallas)
    out = jax.block_until_ready(run(x, w, b))
    ref = res_unit_reference(x, w, b)
    err = float(jnp.max(jnp.abs(out - ref)))
    if out.shape != x.shape or err > 2e-3:
        raise AssertionError(f"mismatch vs reference: max abs err = {err}")
    print("KERNEL_OK")
</pallas_src>

<mosaic_0001>
module attributes {stable_mosaic.version = 11 : i64} {
  func.func @kernel(%arg0: memref<4x512xf32, #tpu.memory_space<vmem>>, %arg1: memref<4x36xf32, #tpu.memory_space<vmem>>, %arg2: memref<4x1xf32, #tpu.memory_space<vmem>>, %arg3: memref<36x512xf32, #tpu.memory_space<vmem>>, %arg4: memref<4x512xf32, #tpu.memory_space<vmem>>, %arg5: memref<4x512xf32, #tpu.memory_space<vmem>>, %arg6: memref<4x512xf32, #tpu.memory_space<vmem>>) attributes {dimension_semantics = [], scalar_prefetch = 0 : i64, scratch_operands = 0 : i64, tpu.core_type = #tpu.core_type<tc>} {
    %c0 = arith.constant 0 : index
    %c0_0 = arith.constant 0 : index
    %0 = vector.load %arg0[%c0, %c0_0] : memref<4x512xf32, #tpu.memory_space<vmem>>, vector<4x512xf32>
    %c511_i32 = arith.constant 511 : i32
    %1 = tpu.dynamic_rotate %0 by %c511_i32 dim 1 : vector<4x512xf32>, i32 -> vector<4x512xf32>
    %2 = arith.maximumf %0, %1 : vector<4x512xf32>
    %c496_i32 = arith.constant 496 : i32
    %3 = tpu.dynamic_rotate %2 by %c496_i32 dim 1 : vector<4x512xf32>, i32 -> vector<4x512xf32>
    %4 = arith.maximumf %2, %3 : vector<4x512xf32>
    %c34_i32 = arith.constant 34 : i32
    %5 = tpu.dynamic_rotate %4 by %c34_i32 dim 1 : vector<4x512xf32>, i32 -> vector<4x512xf32>
    %c32_i32 = arith.constant 32 : i32
    %6 = tpu.dynamic_rotate %4 by %c32_i32 dim 1 : vector<4x512xf32>, i32 -> vector<4x512xf32>
    %c30_i32 = arith.constant 30 : i32
    %7 = tpu.dynamic_rotate %4 by %c30_i32 dim 1 : vector<4x512xf32>, i32 -> vector<4x512xf32>
    %c2_i32 = arith.constant 2 : i32
    %8 = tpu.dynamic_rotate %4 by %c2_i32 dim 1 : vector<4x512xf32>, i32 -> vector<4x512xf32>
    %c510_i32 = arith.constant 510 : i32
    %9 = tpu.dynamic_rotate %4 by %c510_i32 dim 1 : vector<4x512xf32>, i32 -> vector<4x512xf32>
    %c482_i32 = arith.constant 482 : i32
    %10 = tpu.dynamic_rotate %4 by %c482_i32 dim 1 : vector<4x512xf32>, i32 -> vector<4x512xf32>
    %c480_i32 = arith.constant 480 : i32
    %11 = tpu.dynamic_rotate %4 by %c480_i32 dim 1 : vector<4x512xf32>, i32 -> vector<4x512xf32>
    %c478_i32 = arith.constant 478 : i32
    %12 = tpu.dynamic_rotate %4 by %c478_i32 dim 1 : vector<4x512xf32>, i32 -> vector<4x512xf32>
    %13 = tpu.concatenate %5, %6, %7, %8, %4, %9, %10, %11, %12 in 0 : vector<4x512xf32>, vector<4x512xf32>, vector<4x512xf32>, vector<4x512xf32>, vector<4x512xf32>, vector<4x512xf32>, vector<4x512xf32>, vector<4x512xf32>, vector<4x512xf32> -> vector<36x512xf32>
    %c0_1 = arith.constant 0 : index
    %c0_2 = arith.constant 0 : index
    %14 = vector.load %arg3[%c0_1, %c0_2] : memref<36x512xf32, #tpu.memory_space<vmem>>, vector<36x512xf32>
    %15 = arith.mulf %13, %14 : vector<36x512xf32>
    %c0_3 = arith.constant 0 : index
    %c0_4 = arith.constant 0 : index
    %16 = vector.load %arg1[%c0_3, %c0_4] : memref<4x36xf32, #tpu.memory_space<vmem>>, vector<4x36xf32>
    %cst = arith.constant dense<0.000000e+00> : vector<4x512xf32>
    %17 = tpu.matmul %16, %15, %cst {dimension_numbers = #tpu.dot_dimension_numbers<[1], [0], [0], [1], [0, 0, 1, 1], [], []>} : vector<4x36xf32>, vector<36x512xf32>, vector<4x512xf32> -> vector<4x512xf32>
    %c0_5 = arith.constant 0 : index
    %c0_6 = arith.constant 0 : index
    %18 = vector.load %arg2[%c0_5, %c0_6] : memref<4x1xf32, #tpu.memory_space<vmem>>, vector<4x1xf32>
    %19 = vector.broadcast %18 : vector<4x1xf32> to vector<4x512xf32>
    %20 = arith.addf %17, %19 : vector<4x512xf32>
    %c0_7 = arith.constant 0 : index
    %c0_8 = arith.constant 0 : index
    %21 = vector.load %arg4[%c0_7, %c0_8] : memref<4x512xf32, #tpu.memory_space<vmem>>, vector<4x512xf32>
    %22 = vector.extract_strided_slice %21 {offsets = [0, 0], sizes = [1, 512], strides = [1, 1]} : vector<4x512xf32> to vector<1x512xf32>
    %23 = vector.broadcast %22 : vector<1x512xf32> to vector<4x512xf32>
    %24 = arith.mulf %23, %20 : vector<4x512xf32>
    %25 = vector.extract_strided_slice %21 {offsets = [1, 0], sizes = [1, 512], strides = [1, 1]} : vector<4x512xf32> to vector<1x512xf32>
    %c1_i32 = arith.constant 1 : i32
    %26 = tpu.dynamic_rotate %20 by %c1_i32 dim 1 : vector<4x512xf32>, i32 -> vector<4x512xf32>
    %27 = vector.broadcast %25 : vector<1x512xf32> to vector<4x512xf32>
    %28 = arith.mulf %27, %26 : vector<4x512xf32>
    %29 = arith.addf %24, %28 : vector<4x512xf32>
    %30 = vector.extract_strided_slice %21 {offsets = [2, 0], sizes = [1, 512], strides = [1, 1]} : vector<4x512xf32> to vector<1x512xf32>
    %c2_i32_9 = arith.constant 2 : i32
    %31 = tpu.dynamic_rotate %20 by %c2_i32_9 dim 1 : vector<4x512xf32>, i32 -> vector<4x512xf32>
    %32 = vector.broadcast %30 : vector<1x512xf32> to vector<4x512xf32>
    %33 = arith.mulf %32, %31 : vector<4x512xf32>
    %34 = arith.addf %29, %33 : vector<4x512xf32>
    %35 = vector.extract_strided_slice %21 {offsets = [3, 0], sizes = [1, 512], strides = [1, 1]} : vector<4x512xf32> to vector<1x512xf32>
    %c511_i32_10 = arith.constant 511 : i32
    %36 = tpu.dynamic_rotate %20 by %c511_i32_10 dim 1 : vector<4x512xf32>, i32 -> vector<4x512xf32>
    %37 = vector.broadcast %35 : vector<1x512xf32> to vector<4x512xf32>
    %38 = arith.mulf %37, %36 : vector<4x512xf32>
    %39 = arith.addf %34, %38 : vector<4x512xf32>
    %c0_11 = arith.constant 0 : index
    %c0_12 = arith.constant 0 : index
    %40 = vector.load %arg5[%c0_11, %c0_12] : memref<4x512xf32, #tpu.memory_space<vmem>>, vector<4x512xf32>
    %41 = vector.extract_strided_slice %40 {offsets = [0, 0], sizes = [1, 512], strides = [1, 1]} : vector<4x512xf32> to vector<1x512xf32>
    %42 = vector.broadcast %41 : vector<1x512xf32> to vector<4x512xf32>
    %43 = arith.mulf %42, %39 : vector<4x512xf32>
    %44 = vector.extract_strided_slice %40 {offsets = [1, 0], sizes = [1, 512], strides = [1, 1]} : vector<4x512xf32> to vector<1x512xf32>
    %c16_i32 = arith.constant 16 : i32
    %45 = tpu.dynamic_rotate %39 by %c16_i32 dim 1 : vector<4x512xf32>, i32 -> vector<4x512xf32>
    %46 = vector.broadcast %44 : vector<1x512xf32> to vector<4x512xf32>
    %47 = arith.mulf %46, %45 : vector<4x512xf32>
    %48 = arith.addf %43, %47 : vector<4x512xf32>
    %49 = vector.extract_strided_slice %40 {offsets = [2, 0], sizes = [1, 512], strides = [1, 1]} : vector<4x512xf32> to vector<1x512xf32>
    %c32_i32_13 = arith.constant 32 : i32
    %50 = tpu.dynamic_rotate %39 by %c32_i32_13 dim 1 : vector<4x512xf32>, i32 -> vector<4x512xf32>
    %51 = vector.broadcast %49 : vector<1x512xf32> to vector<4x512xf32>
    %52 = arith.mulf %51, %50 : vector<4x512xf32>
    %53 = arith.addf %48, %52 : vector<4x512xf32>
    %54 = vector.extract_strided_slice %40 {offsets = [3, 0], sizes = [1, 512], strides = [1, 1]} : vector<4x512xf32> to vector<1x512xf32>
    %c496_i32_14 = arith.constant 496 : i32
    %55 = tpu.dynamic_rotate %39 by %c496_i32_14 dim 1 : vector<4x512xf32>, i32 -> vector<4x512xf32>
    %56 = vector.broadcast %54 : vector<1x512xf32> to vector<4x512xf32>
    %57 = arith.mulf %56, %55 : vector<4x512xf32>
    %58 = arith.addf %53, %57 : vector<4x512xf32>
    %59 = arith.negf %58 : vector<4x512xf32>
    %60 = math.exp %59 : vector<4x512xf32>
    %cst_15 = arith.constant 1.000000e+00 : f32
    %61 = vector.broadcast %cst_15 : f32 to vector<4x512xf32>
    %62 = arith.addf %61, %60 : vector<4x512xf32>
    %63 = arith.divf %61, %62 : vector<4x512xf32>
    %64 = arith.mulf %0, %63 : vector<4x512xf32>
    %c0_16 = arith.constant 0 : index
    %c0_17 = arith.constant 0 : index
    %65 = vector.load %arg6[%c0_16, %c0_17] : memref<4x512xf32, #tpu.memory_space<vmem>>, vector<4x512xf32>
    tpu.vector_store %arg6[%c0_16, %c0_17], %64 {strides = array<i32>} : memref<4x512xf32, #tpu.memory_space<vmem>>, vector<4x512xf32>,
    return
  }
}

</mosaic_0001>

<bundles_post_ra>
// kernel: res_unit_pallas.1
= control target key start
LH: loop header
LB: loop body
LE: loop exit
PB: predicated region body
PF: predicated region fallthrough
CT: control target
= control target key end

     0   :  { %s975_s25 = smov 127   ;;  %v39_v4 = vlaneseq  ;;  %s976_s26 = smov 112   ;;  %v984_v34 = vmov 0.0   ;;  %v986_v35 = vmov 0   ;;  %vm243_vm3 = vcmask 1043456   ;;  %s1498_s0 = inlined_call_operand.vmem [shape: f32[4,512], index: 0, kind: input, shape index: {}]   ;;  %s1499_s2 = inlined_call_operand.vmem [shape: f32[4,1], index: 2, kind: input, shape index: {}]   ;;  %s1500_s3 = inlined_call_operand.vmem [shape: f32[36,512], index: 3, kind: input, shape index: {}]   ;;  %s1501_s1 = inlined_call_operand.vmem [shape: f32[4,36], index: 1, kind: input, shape index: {}]   ;;  %s1502_s4 = inlined_call_operand.vmem [shape: f32[4,512], index: 4, kind: input, shape index: {}]   ;;  %s1503_s5 = inlined_call_operand.vmem [shape: f32[4,512], index: 5, kind: input, shape index: {}]   ;;  %s1504_s6 = inlined_call_operand.vmem [shape: f32[4,512], index: 6, kind: output, shape index: {}]  }
   0x1   :  { %v24_v0 = vld [vmem:[%s1498_s0 + $0x8] sm:$0xff]  ;;  %v1030_v1 = vld [vmem:[%s1498_s0] sm:$0xff]  ;;  %s977_s27 = smov 96   ;;  %s978_s28 = smov 94   ;;  %387 = vmatprep.mubr.f32.mxu0 %v984_v34  ;;  %458 = vmatprep.mubr.f32.mxu1 %v984_v34  ;;  %v278_v48 = vld [vmem:[%s1500_s3 + $0x90] sm:$0xf] }
   0x2   :  { %35 = vrot.lane.b32.xlu1 %v24_v0, %s975_s25  ;;  %31 = vrot.lane.b32.xlu0 %v1030_v1, %s975_s25  ;;  %v28_v2 = vcombine.high %v24_v0, %v24_v0  ;;  %v27_v3 = vcombine.high %v1030_v1, %v1030_v1  ;;  %v1040_v5 = vand.u32 127, %v39_v4  ;;  %s979_s29 = smov 126   ;;  %s980_s30 = smov 98   ;;  %v301_v36 = vld [vmem:[%s1499_s2] sm:$0xf]  ;;  %vm307_vm11 = vcmask 293888  }
   0x3   :  { %s981_s7 = smov 2   ;;  %s982_s8 = smov 32   ;;  %955 = vset.pattern.permute.xlu0 %v986_v35  ;;  %v277_v43 = vld [vmem:[%s1500_s3 + $0x88] sm:$0xf]  ;;  %v276_v44 = vld [vmem:[%s1500_s3 + $0x80] sm:$0xf] }
   0x4   :  { %vm41_vm0 = vcmp.lt.s32.totalorder %v1040_v5, 127  ;;  %vm70_vm1 = vcmp.lt.s32.totalorder %v1040_v5, 112  ;;  %s983_s9 = smov 30   ;;  %s985_s10 = smov 34   ;;  %vm190_vm2 = vcmp.lt.s32.totalorder %v1040_v5, 94  ;;  %vm177_vm4 = vcmp.lt.s32.totalorder %v1040_v5, 96 }
   0x5   :  { %v279_v49 = vld [vmem:[%s1500_s3 + $0x98] sm:$0xf]  ;;  %vm151_vm5 = vcmp.lt.s32.totalorder %v1040_v5, 126  ;;  %vm164_vm6 = vcmp.lt.s32.totalorder %v1040_v5, 98  ;;  %vm138_vm7 = vcmp.lt.s32.totalorder %v1040_v5, 2  ;;  %vm125_vm8 = vcmp.lt.s32.totalorder %v1040_v5, 30 }
   0x6   :  { %37 = vrot.lane.b32.xlu1 %v28_v2, %s975_s25  ;;  %33 = vrot.lane.b32.xlu0 %v27_v3, %s975_s25  ;;  %vm112_vm9 = vcmp.lt.s32.totalorder %v1040_v5, 32  ;;  %vm99_vm10 = vcmp.lt.s32.totalorder %v1040_v5, 34  ;;  %vm517_vm12 = vcmp.lt.s32.totalorder %v1040_v5, 1  ;;  %vm730_vm13 = vcmp.lt.s32.totalorder %v1040_v5, 16 }
  0x74   :  { %v36_v6 = vpop.permute.xlu1 %35  ;;  %v32_v7 = vpop.permute.xlu0 %31 }
  0x78   :  { %v38_v8 = vpop.permute.xlu1 %37  ;;  %v34_v9 = vpop.permute.xlu0 %33 }
  0x79   :  { %v42_v10 = vsel %vm41_vm0, %v36_v6, %v38_v8  ;;  %v45_v11 = vsel %vm41_vm0, %v38_v8, %v32_v7  ;;  %v43_v12 = vsel %vm41_vm0, %v34_v9, %v36_v6  ;;  %v44_v13 = vsel %vm41_vm0, %v32_v7, %v34_v9 }
  0x7a   :  { %v51_v14 = vcombine.low %v42_v10, %v45_v11  ;;  %v50_v15 = vcombine.low %v44_v13, %v43_v12 }
  0x7c   :  { %v54_v16 = vmax.f32 %v1030_v1, %v50_v15  ;;  %v55_v18 = vmax.f32 %v24_v0, %v51_v14 }
  0x7e   :  { %62 = vrot.lane.b32.xlu0 %v54_v16, %s976_s26  ;;  %v58_v17 = vcombine.high %v54_v16, %v54_v16  ;;  %v59_v19 = vcombine.high %v55_v18, %v55_v18 }
  0x80   :  { %64 = vrot.lane.b32.xlu1 %v58_v17, %s976_s26  ;;  %v273_v17 = vld [vmem:[%s1500_s3 + $0x68] sm:$0xff] }
  0x82   :  { %66 = vrot.lane.b32.xlu0 %v55_v18, %s976_s26 }
  0x84   :  { %68 = vrot.lane.b32.xlu1 %v59_v19, %s976_s26 }
  0xf0   :  { %v63_v20 = vpop.permute.xlu0 %62 }
  0xf2   :  { %v65_v21 = vpop.permute.xlu1 %64 }
  0xf3   :  { %v73_v23 = vsel %vm70_vm1, %v63_v20, %v65_v21 }
  0xf4   :  { %v67_v22 = vpop.permute.xlu0 %66 }
  0xf5   :  { %v72_v24 = vsel %vm70_vm1, %v65_v21, %v67_v22  ;;  %v272_v21 = vld [vmem:[%s1500_s3 + $0x60] sm:$0xff] }
  0xf6   :  { %v79_v25 = vcombine.low %v73_v23, %v72_v24  ;;  %v69_v26 = vpop.permute.xlu1 %68 }
  0xf7   :  { %v71_v27 = vsel %vm70_vm1, %v67_v22, %v69_v26  ;;  %v74_v28 = vsel %vm70_vm1, %v69_v26, %v63_v20 }
  0xf8   :  { %v1065_v29 = vmax.f32 %v54_v16, %v79_v25  ;;  %v80_v30 = vcombine.low %v71_v27, %v74_v28  ;;  %v269_v27 = vld [vmem:[%s1500_s3 + $0x48] sm:$0xff]  ;;  %v275_v28 = vld [vmem:[%s1500_s3 + $0x78] sm:$0xff] }
  0xfa   :  { %v1067_v31 = vmax.f32 %v55_v18, %v80_v30  ;;  %169 = vrot.lane.b32.xlu0 %v1065_v29, %s977_s27  ;;  %v1072_v32 = vcombine.high %v1065_v29, %v1065_v29  ;;  %v274_v30 = vld [vmem:[%s1500_s3 + $0x70] sm:$0xff] }
  0xfc   :  { %171 = vrot.lane.b32.xlu1 %v1072_v32, %s977_s27  ;;  %v1078_v33 = vcombine.high %v1067_v31, %v1067_v31 }
  0xfe   :  { %173 = vrot.lane.b32.xlu0 %v1067_v31, %s977_s27 }
 0x100   :  { %175 = vrot.lane.b32.xlu1 %v1078_v33, %s977_s27 }
 0x102   :  { %182 = vrot.lane.b32.xlu0 %v1065_v29, %s978_s28 }
 0x104   :  { %184 = vrot.lane.b32.xlu1 %v1072_v32, %s978_s28 }
 0x106   :  { %186 = vrot.lane.b32.xlu0 %v1067_v31, %s978_s28 }
 0x108   :  { %188 = vrot.lane.b32.xlu1 %v1078_v33, %s978_s28 }
 0x10a   :  { %143 = vrot.lane.b32.xlu0 %v1065_v29, %s979_s29 }
 0x10c   :  { %145 = vrot.lane.b32.xlu1 %v1072_v32, %s979_s29 }
 0x10e   :  { %147 = vrot.lane.b32.xlu0 %v1067_v31, %s979_s29 }
 0x110   :  { %149 = vrot.lane.b32.xlu1 %v1078_v33, %s979_s29 }
 0x112   :  { %156 = vrot.lane.b32.xlu0 %v1065_v29, %s980_s30 }
 0x114   :  { %158 = vrot.lane.b32.xlu1 %v1072_v32, %s980_s30 }
 0x116   :  { %160 = vrot.lane.b32.xlu0 %v1067_v31, %s980_s30 }
 0x118   :  { %162 = vrot.lane.b32.xlu1 %v1078_v33, %s980_s30 }
 0x11a   :  { %130 = vrot.lane.b32.xlu0 %v1065_v29, %s981_s7 }
 0x11c   :  { %132 = vrot.lane.b32.xlu1 %v1072_v32, %s981_s7 }
 0x11e   :  { %134 = vrot.lane.b32.xlu0 %v1067_v31, %s981_s7 }
 0x120   :  { %136 = vrot.lane.b32.xlu1 %v1078_v33, %s981_s7 }
 0x122   :  { %104 = vrot.lane.b32.xlu0 %v1065_v29, %s982_s8 }
 0x124   :  { %106 = vrot.lane.b32.xlu1 %v1072_v32, %s982_s8 }
 0x126   :  { %108 = vrot.lane.b32.xlu0 %v1067_v31, %s982_s8 }
 0x128   :  { %110 = vrot.lane.b32.xlu1 %v1078_v33, %s982_s8 }
 0x12a   :  { %117 = vrot.lane.b32.xlu0 %v1065_v29, %s983_s9 }
 0x12c   :  { %119 = vrot.lane.b32.xlu1 %v1072_v32, %s983_s9 }
 0x12e   :  { %121 = vrot.lane.b32.xlu0 %v1067_v31, %s983_s9 }
 0x130   :  { %123 = vrot.lane.b32.xlu1 %v1078_v33, %s983_s9 }
 0x132   :  { %91 = vrot.lane.b32.xlu0 %v1065_v29, %s985_s10 }
 0x134   :  { %93 = vrot.lane.b32.xlu1 %v1072_v32, %s985_s10 }
 0x136   :  { %95 = vrot.lane.b32.xlu0 %v1067_v31, %s985_s10 }
 0x138   :  { %97 = vrot.lane.b32.xlu1 %v1078_v33, %s985_s10 }
 0x13a   :  { %304 = vperm.xlu0 %955, %v301_v36  }
 0x16c   :  { %v170_v37 = vpop.permute.xlu0 %169 }
 0x16e   :  { %v172_v38 = vpop.permute.xlu1 %171 }
 0x16f   :  { %v180_v61 = vsel %vm177_vm4, %v170_v37, %v172_v38 }
 0x170   :  { %v174_v39 = vpop.permute.xlu0 %173  ;;  %v235_v6 = vrot.slane %v180_v61, 4  ;;  %v265_v61 = vld [vmem:[%s1500_s3 + $0x28] sm:$0xff] }
 0x171   :  { %v179_v2 = vsel %vm177_vm4, %v172_v38, %v174_v39 }
 0x172   :  { %v176_v40 = vpop.permute.xlu1 %175  ;;  %v236_v14 = vrot.slane %v179_v2, 4 }
 0x173   :  { %v178_v10 = vsel %vm177_vm4, %v174_v39, %v176_v40  ;;  %v181_v11 = vsel %vm177_vm4, %v176_v40, %v170_v37  ;;  %v268_v37 = vld [vmem:[%s1500_s3 + $0x40] sm:$0xff] }
 0x174   :  { %v183_v41 = vpop.permute.xlu0 %182  ;;  %v237_v22 = vrot.slane %v178_v10, 4  ;;  %v238_v23 = vrot.slane %v181_v11, 4 }
 0x176   :  { %v185_v42 = vpop.permute.xlu1 %184 }
 0x177   :  { %v193_v45 = vsel %vm190_vm2, %v183_v41, %v185_v42 }
 0x178   :  { %v187_v46 = vpop.permute.xlu0 %186  ;;  %v296_v52 = vmul.f32 %v276_v44, %v193_v45 }
 0x179   :  { %v192_v47 = vsel %vm190_vm2, %v185_v42, %v187_v46 }
 0x17a   :  { %v189_v50 = vpop.permute.xlu1 %188  ;;  %v297_v51 = vmul.f32 %v277_v43, %v192_v47  ;;  %v271_v43 = vld [vmem:[%s1500_s3 + $0x58] sm:$0xff]  ;;  %v270_v47 = vld [vmem:[%s1500_s3 + $0x50] sm:$0xff] }
 0x17b   :  { %v191_v53 = vsel %vm190_vm2, %v187_v46, %v189_v50  ;;  %v194_v54 = vsel %vm190_vm2, %v189_v50, %v183_v41 }
 0x17c   :  { %v298_v55 = vmul.f32 %v278_v48, %v191_v53  ;;  %v144_v56 = vpop.permute.xlu0 %143  ;;  %931 = vmatprep.subr.msk.mxu0 %vm243_vm3, %v297_v51  ;;  %v299_v57 = vmul.f32 %v279_v49, %v194_v54 }
 0x17d   :  { %932 = vmatpush1.msk.msra.mxu0 %vm243_vm3, %v296_v52 }
 0x17e   :  { %934 = vmatprep.subr.msk.mxu1 %vm243_vm3, %v299_v57  ;;  %v146_v58 = vpop.permute.xlu1 %145 }
 0x17f   :  { %935 = vmatpush1.msk.msra.mxu1 %vm243_vm3, %v298_v55  ;;  %v154_v63 = vsel %vm151_vm5, %v144_v56, %v146_v58 }
 0x180   :  { %v148_v59 = vpop.permute.xlu0 %147  ;;  %v223_v12 = vrot.slane %v154_v63, 4 }
 0x181   :  { %v153_v62 = vsel %vm151_vm5, %v146_v58, %v148_v59 }
 0x182   :  { %v150_v60 = vpop.permute.xlu1 %149  ;;  %v224_v7 = vrot.slane %v153_v62, 4 }
 0x183   :  { %v155_v3 = vsel %vm151_vm5, %v150_v60, %v144_v56  ;;  %v152_v8 = vsel %vm151_vm5, %v148_v59, %v150_v60 }
 0x184   :  { %v157_v0 = vpop.permute.xlu0 %156  ;;  %v226_v15 = vrot.slane %v155_v3, 4  ;;  %v225_v18 = vrot.slane %v152_v8, 4  ;;  %v253_v26 = vsel %vm243_vm3, %v1072_v32, %v224_v7  ;;  %v252_v32 = vsel %vm243_vm3, %v1065_v29, %v223_v12  ;;  %v264_v12 = vld [vmem:[%s1500_s3 + $0x20] sm:$0xff] }
 0x185   :  { %v289_v44 = vmul.f32 %v269_v27, %v253_v26  ;;  %v288_v49 = vmul.f32 %v268_v37, %v252_v32 }
 0x186   :  { %v159_v9 = vpop.permute.xlu1 %158  ;;  %v255_v42 = vsel %vm243_vm3, %v1078_v33, %v226_v15  ;;  %v254_v46 = vsel %vm243_vm3, %v1067_v31, %v225_v18  ;;  %v266_v18 = vld [vmem:[%s1500_s3 + $0x30] sm:$0xff] }
 0x187   :  { %v167_v13 = vsel %vm164_vm6, %v157_v0, %v159_v9  ;;  %v291_v33 = vmul.f32 %v271_v43, %v255_v42  ;;  %v290_v51 = vmul.f32 %v270_v47, %v254_v46  ;;  %v260_v43 = vld [vmem:[%s1500_s3] sm:$0xff]  ;;  %v262_v47 = vld [vmem:[%s1500_s3 + $0x10] sm:$0xff] }
 0x188   :  { %v161_v16 = vpop.permute.xlu0 %160  ;;  %v256_v19 = vsel %vm243_vm3, %v167_v13, %v235_v6  ;;  %v267_v13 = vld [vmem:[%s1500_s3 + $0x38] sm:$0xff] }
 0x189   :  { %v166_v20 = vsel %vm164_vm6, %v159_v9, %v161_v16  ;;  %v292_v41 = vmul.f32 %v272_v21, %v256_v19 }
 0x18a   :  { %v257_v24 = vsel %vm243_vm3, %v166_v20, %v236_v14  ;;  %v163_v25 = vpop.permute.xlu1 %162 }
 0x18b   :  { %v165_v34 = vsel %vm164_vm6, %v161_v16, %v163_v25  ;;  %v168_v35 = vsel %vm164_vm6, %v163_v25, %v157_v0  ;;  %v293_v36 = vmul.f32 %v273_v17, %v257_v24 }
 0x18c   :  { %v258_v38 = vsel %vm243_vm3, %v165_v34, %v237_v22  ;;  %v259_v39 = vsel %vm243_vm3, %v168_v35, %v238_v23  ;;  %v131_v40 = vpop.permute.xlu0 %130 }
 0x18d   :  { %347 = vmatprep.subr.mxu0 %v293_v36  ;;  %v295_v29 = vmul.f32 %v275_v28, %v259_v39  ;;  %v294_v45 = vmul.f32 %v274_v30, %v258_v38  ;;  %v261_v28 = vld [vmem:[%s1500_s3 + $0x8] sm:$0xff] }
 0x18e   :  { %348 = vmatpush1.msra.mxu0 %v292_v41  ;;  %v133_v48 = vpop.permute.xlu1 %132 }
 0x18f   :  { %349 = vmatprep.subr.mxu0 %v289_v44  ;;  %418 = vmatprep.subr.mxu1 %v295_v29  ;;  %v141_v56 = vsel %vm138_vm7, %v131_v40, %v133_v48  ;;  %v263_v44 = vld [vmem:[%s1500_s3 + $0x18] sm:$0xff]  ;;  %s987_s3 = smov 1  }
 0x190   :  { %v135_v50 = vpop.permute.xlu0 %134  ;;  %350 = vmatpush1.msra.mxu0 %v288_v49  ;;  %419 = vmatpush1.msra.mxu1 %v294_v45  ;;  %v212_v58 = vrot.slane %v141_v56, 4 }
 0x191   :  { %420 = vmatprep.subr.mxu1 %v291_v33  ;;  %v140_v59 = vsel %vm138_vm7, %v133_v48, %v135_v50 }
 0x192   :  { %421 = vmatpush1.msra.mxu1 %v290_v51  ;;  %v137_v52 = vpop.permute.xlu1 %136  ;;  %v213_v6 = vrot.slane %v140_v59, 4  ;;  %v300_v51 = vld [vmem:[%s1501_s1] sm:$0xf] }
 0x193   :  { %v139_v62 = vsel %vm138_vm7, %v135_v50, %v137_v52  ;;  %v142_v63 = vsel %vm138_vm7, %v137_v52, %v131_v40 }
 0x194   :  { %v105_v53 = vpop.permute.xlu0 %104  ;;  %v211_v9 = vrot.slane %v142_v63, 4  ;;  %v214_v10 = vrot.slane %v139_v62, 4 }
 0x196   :  { %v107_v54 = vpop.permute.xlu1 %106 }
 0x197   :  { %v115_v14 = vsel %vm112_vm9, %v105_v53, %v107_v54 }
 0x198   :  { %v109_v31 = vpop.permute.xlu0 %108  ;;  %v200_v24 = vrot.slane %v115_v14, 4 }
 0x199   :  { %v114_v25 = vsel %vm112_vm9, %v107_v54, %v109_v31 }
 0x19a   :  { %v111_v55 = vpop.permute.xlu1 %110  ;;  %v201_v37 = vrot.slane %v114_v25, 4 }
 0x19b   :  { %v113_v30 = vsel %vm112_vm9, %v109_v31, %v111_v55  ;;  %v116_v34 = vsel %vm112_vm9, %v111_v55, %v105_v53 }
 0x19c   :  { %v118_v57 = vpop.permute.xlu0 %117  ;;  %v199_v40 = vrot.slane %v116_v34, 4  ;;  %v202_v41 = vrot.slane %v113_v30, 4 }
 0x19e   :  { %v120_v60 = vpop.permute.xlu1 %119 }
 0x19f   :  { %v128_v0 = vsel %vm125_vm8, %v118_v57, %v120_v60 }
 0x1a0   :  { %v249_v2 = vsel %vm243_vm3, %v128_v0, %v212_v58  ;;  %v122_v3 = vpop.permute.xlu0 %121 }
 0x1a1   :  { %v127_v7 = vsel %vm125_vm8, %v120_v60, %v122_v3  ;;  %v285_v8 = vmul.f32 %v265_v61, %v249_v2  ;;  %v470_v61 = vshrl.u32 %v39_v4, 7  ;;  %v465_v2 = vld [vmem:[%s1502_s4] sm:$0xff] }
 0x1a2   :  { %v124_v11 = vpop.permute.xlu1 %123  ;;  %v250_v15 = vsel %vm243_vm3, %v127_v7, %v213_v6  ;;  %v1299_v7 = vld [vmem:[%s1502_s4 + $0x8] sm:$0xff]  ;;  %s988_s4 = smov 16  }
 0x1a3   :  { %v126_v16 = vsel %vm125_vm8, %v122_v3, %v124_v11  ;;  %v129_v17 = vsel %vm125_vm8, %v124_v11, %v118_v57  ;;  %351 = vmatprep.subr.mxu0 %v285_v8  ;;  %v286_v27 = vmul.f32 %v266_v18, %v250_v15  ;;  %v1287_v0 = vsub.s32 0, %v470_v61 }
 0x1a4   :  { %v248_v19 = vsel %vm243_vm3, %v129_v17, %v211_v9  ;;  %v251_v20 = vsel %vm243_vm3, %v126_v16, %v214_v10  ;;  %v92_v21 = vpop.permute.xlu0 %91  ;;  %v1292_v3 = vsub.s32 4, %v470_v61  ;;  %v1294_v6 = vsub.s32 5, %v470_v61 }
 0x1a5   :  { %v284_v22 = vmul.f32 %v264_v12, %v248_v19  ;;  %v287_v23 = vmul.f32 %v267_v13, %v251_v20  ;;  %v1301_v8 = vsub.s32 1, %v470_v61  ;;  %v1303_v10 = vsub.s32 2, %v470_v61 }
 0x1a6   :  { %v94_v26 = vpop.permute.xlu1 %93  ;;  %v1305_v11 = vsub.s32 6, %v470_v61  ;;  %v472_v12 = vrot.slane %v465_v2, %v1287_v0  ;;  %v476_v13 = vrot.slane %v465_v2, %v1292_v3  ;;  %v480_v14 = vrot.slane %v1299_v7, %v1287_v0 }
 0x1a7   :  { %v102_v35 = vsel %vm99_vm10, %v92_v21, %v94_v26  ;;  %352 = vmatpush1.msra.mxu0 %v284_v22  ;;  %422 = vmatprep.subr.mxu1 %v287_v23  ;;  %v529_v15 = vrot.slane %v465_v2, %v1294_v6  ;;  %v484_v16 = vrot.slane %v1299_v7, %v1292_v3 }
 0x1a8   :  { %v245_v36 = vsel %vm243_vm3, %v102_v35, %v200_v24  ;;  %v96_v32 = vpop.permute.xlu0 %95  ;;  %423 = vmatpush1.msra.mxu1 %v286_v27  ;;  %v533_v17 = vrot.slane %v1299_v7, %v1301_v8  ;;  %v525_v18 = vrot.slane %v465_v2, %v1301_v8  ;;  %v537_v19 = vrot.slane %v1299_v7, %v1294_v6 }
 0x1a9   :  { %v101_v38 = vsel %vm99_vm10, %v94_v26, %v96_v32  ;;  %v281_v39 = vmul.f32 %v261_v28, %v245_v36  ;;  %v585_v22 = vrot.slane %v465_v2, %v1305_v11  ;;  %v589_v23 = vrot.slane %v1299_v7, %v1303_v10 }
 0x1aa   :  { %v98_v42 = vpop.permute.xlu1 %97  ;;  %v246_v29 = vsel %vm243_vm3, %v101_v38, %v201_v37  ;;  %v492_v24 = vrot.slane %v472_v12, %v1287_v0  ;;  %v581_v25 = vrot.slane %v465_v2, %v1303_v10  ;;  %v1325_v26 = vsub.s32 3, %v470_v61 }
 0x1ab   :  { %v100_v45 = vsel %vm99_vm10, %v96_v32, %v98_v42  ;;  %v103_v46 = vsel %vm99_vm10, %v98_v42, %v92_v21  ;;  %353 = vmatprep.subr.mxu0 %v281_v39  ;;  %v282_v52 = vmul.f32 %v262_v47, %v246_v29  ;;  %v1327_v27 = vsub.s32 7, %v470_v61 }
 0x1ac   :  { %v244_v48 = vsel %vm243_vm3, %v103_v46, %v199_v40  ;;  %v247_v49 = vsel %vm243_vm3, %v100_v45, %v202_v41  ;;  %v496_v28 = vrot.slane %v476_v13, %v1287_v0  ;;  %v500_v30 = vrot.slane %v480_v14, %v1287_v0 }
 0x1ad   :  { %v280_v33 = vmul.f32 %v260_v43, %v244_v48  ;;  %v283_v50 = vmul.f32 %v263_v44, %v247_v49  ;;  %v549_v34 = vrot.slane %v529_v15, %v1301_v8  ;;  %v504_v35 = vrot.slane %v484_v16, %v1287_v0 }
 0x1ae   :  { %v553_v36 = vrot.slane %v533_v17, %v1301_v8  ;;  %v545_v37 = vrot.slane %v525_v18, %v1301_v8  ;;  %v557_v38 = vrot.slane %v537_v19, %v1301_v8  ;;  %v605_v41 = vrot.slane %v585_v22, %v1303_v10 }
 0x1af   :  { %354 = vmatpush1.msra.mxu0 %v280_v33  ;;  %424 = vmatprep.subr.mxu1 %v283_v50  ;;  %v609_v42 = vrot.slane %v589_v23, %v1303_v10  ;;  %v593_v43 = vrot.slane %v1299_v7, %v1305_v11  ;;  %v601_v45 = vrot.slane %v581_v25, %v1303_v10 }
 0x1b0   :  { %933 = vmatmul.mubr.msk.f32.vlgmr.msra.gmra.mxu0 %vm307_vm11, %v300_v51  ;;  %425 = vmatpush1.msra.mxu1 %v282_v52  ;;  %v637_v46 = vrot.slane %v465_v2, %v1325_v26  ;;  %v641_v47 = vrot.slane %v465_v2, %v1327_v27 }
 0x1b1   :  { %936 = vmatmul.mubr.msk.f32.vlgmr.msra.gmra.mxu1 %vm307_vm11, %v300_v51 }
 0x1b2   :  { %v661_v2 = vrot.slane %v641_v47, %v1325_v26 }
 0x1b5   :  { %v305_v53 = vpop.permute.xlu0 %304 }
 0x270   :  { %v389_v54 = vpop.f32.mrf.mxu0 }
 0x271   :  { %v1263_v31 = vadd.f32 %v389_v54, %v305_v53  ;;  %v460_v55 = vpop.f32.mrf.mxu1  ;;  %v645_v54 = vrot.slane %v1299_v7, %v1325_v26 }
 0x272   :  { %v1265_v56 = vadd.f32 %v460_v55, %v305_v53  ;;  %v391_v57 = vpop.f32.mrf.mxu0  ;;  %v649_v55 = vrot.slane %v1299_v7, %v1327_v27 }
 0x273   :  { %509 = vrot.lane.b32.xlu1 %v1263_v31, %s987_s3  ;;  %v392_v58 = vadd.f32 %v391_v57, %v305_v53  ;;  %v462_v59 = vpop.f32.mrf.mxu1  ;;  %v505_v50 = vmul.f32 %v492_v24, %v1263_v31 }
 0x274   :  { %513 = vrot.lane.b32.xlu0 %v1265_v56, %s987_s3  ;;  %v1271_v60 = vadd.f32 %v462_v59, %v305_v53  ;;  %v507_v49 = vmul.f32 %v500_v30, %v1265_v56  ;;  %v669_v17 = vrot.slane %v649_v55, %v1325_v26 }
 0x275   :  { %v506_v48 = vmul.f32 %v496_v28, %v392_v58 }
 0x276   :  { %v508_v7 = vmul.f32 %v504_v35, %v1271_v60 }
 0x277   :  { %511 = vrot.lane.b32.xlu1 %v392_v58, %s987_s3 }
 0x278   :  { %566 = vrot.lane.b32.xlu0 %v1263_v31, %s981_s7 }
 0x27b   :  { %515 = vrot.lane.b32.xlu1 %v1271_v60, %s987_s3 }
 0x27c   :  { %570 = vrot.lane.b32.xlu0 %v1265_v56, %s981_s7 }
 0x27f   :  { %568 = vrot.lane.b32.xlu1 %v392_v58, %s981_s7 }
 0x280   :  { %622 = vrot.lane.b32.xlu0 %v1263_v31, %s975_s25 }
 0x283   :  { %572 = vrot.lane.b32.xlu1 %v1271_v60, %s981_s7 }
 0x284   :  { %626 = vrot.lane.b32.xlu0 %v1265_v56, %s975_s25  ;;  %v613_v56 = vrot.slane %v593_v43, %v1303_v10  ;;  %v1405_v43 = vld [vmem:[%s1503_s5] sm:$0xff] }
 0x285   :  { %v689_v47 = vrot.slane %v1405_v43, %v1292_v3 }
 0x287   :  { %624 = vrot.lane.b32.xlu1 %v392_v58, %s975_s25 }
 0x28b   :  { %628 = vrot.lane.b32.xlu1 %v1271_v60, %s975_s25 }
 0x2e5   :  { %v510_v62 = vpop.permute.xlu1 %509 }
 0x2e6   :  { %v514_v63 = vpop.permute.xlu0 %513 }
 0x2e9   :  { %v512_v4 = vpop.permute.xlu1 %511 }
 0x2ea   :  { %v567_v9 = vpop.permute.xlu0 %566  ;;  %v520_v32 = vsel %vm517_vm12, %v510_v62, %v512_v4  ;;  %v519_v51 = vsel %vm517_vm12, %v512_v4, %v514_v63 }
 0x2eb   :  { %v559_v33 = vmul.f32 %v549_v34, %v520_v32  ;;  %v560_v4 = vmul.f32 %v553_v36, %v519_v51 }
 0x2ed   :  { %v516_v20 = vpop.permute.xlu1 %515  ;;  %v563_v12 = vadd.f32 %v559_v33, %v506_v48  ;;  %v564_v25 = vadd.f32 %v560_v4, %v507_v49  ;;  %v738_v48 = vrot.slane %v1405_v43, %v1301_v8 }
 0x2ee   :  { %v571_v21 = vpop.permute.xlu0 %570  ;;  %v521_v40 = vsel %vm517_vm12, %v516_v20, %v510_v62  ;;  %v518_v57 = vsel %vm517_vm12, %v514_v63, %v516_v20  ;;  %v657_v62 = vrot.slane %v637_v46, %v1325_v26  ;;  %v685_v46 = vrot.slane %v1405_v43, %v1287_v0 }
 0x2ef   :  { %v558_v52 = vmul.f32 %v545_v37, %v521_v40  ;;  %v561_v13 = vmul.f32 %v557_v38, %v518_v57  ;;  %v798_v57 = vrot.slane %v1405_v43, %v1305_v11 }
 0x2f0   :  { %v705_v55 = vrot.slane %v685_v46, %v1287_v0 }
 0x2f1   :  { %v569_v39 = vpop.permute.xlu1 %568  ;;  %v562_v14 = vadd.f32 %v558_v52, %v505_v50  ;;  %v565_v28 = vadd.f32 %v561_v13, %v508_v7  ;;  %v742_v52 = vrot.slane %v1405_v43, %v1294_v6 }
 0x2f2   :  { %v576_v44 = vsel %vm138_vm7, %v567_v9, %v569_v39  ;;  %v623_v29 = vpop.permute.xlu0 %622  ;;  %v575_v59 = vsel %vm138_vm7, %v569_v39, %v571_v21 }
 0x2f3   :  { %v615_v58 = vmul.f32 %v605_v41, %v576_v44  ;;  %v616_v18 = vmul.f32 %v609_v42, %v575_v59  ;;  %v850_v59 = vrot.slane %v1405_v43, %v1325_v26 }
 0x2f5   :  { %v573_v53 = vpop.permute.xlu1 %572  ;;  %v619_v19 = vadd.f32 %v615_v58, %v563_v12  ;;  %v620_v36 = vadd.f32 %v616_v18, %v564_v25  ;;  %v794_v58 = vrot.slane %v1405_v43, %v1303_v10  ;;  %v762_v12 = vrot.slane %v742_v52, %v1301_v8 }
 0x2f6   :  { %v577_v31 = vsel %vm138_vm7, %v573_v53, %v567_v9  ;;  %v574_v63 = vsel %vm138_vm7, %v571_v21, %v573_v53  ;;  %v627_v15 = vpop.permute.xlu0 %626  ;;  %v665_v9 = vrot.slane %v645_v54, %v1325_v26  ;;  %v870_v18 = vrot.slane %v850_v59, %v1325_v26 }
 0x2f7   :  { %v614_v61 = vmul.f32 %v601_v45, %v577_v31  ;;  %v617_v60 = vmul.f32 %v613_v56, %v574_v63  ;;  %v1410_v45 = vld [vmem:[%s1503_s5 + $0x8] sm:$0xff]  ;;  %v709_v56 = vrot.slane %v689_v47, %v1287_v0 }
 0x2f8   :  { %v693_v33 = vrot.slane %v1410_v45, %v1287_v0  ;;  %v697_v50 = vrot.slane %v1410_v45, %v1292_v3  ;;  %v746_v53 = vrot.slane %v1410_v45, %v1301_v8  ;;  %v750_v54 = vrot.slane %v1410_v45, %v1294_v6 }
 0x2f9   :  { %v625_v16 = vpop.permute.xlu1 %624  ;;  %v618_v23 = vadd.f32 %v614_v61, %v562_v14  ;;  %v621_v38 = vadd.f32 %v617_v60, %v565_v28  ;;  %v802_v3 = vrot.slane %v1410_v45, %v1303_v10  ;;  %v806_v31 = vrot.slane %v1410_v45, %v1305_v11 }
 0x2fa   :  { %v631_v20 = vsel %vm41_vm0, %v625_v16, %v627_v15  ;;  %v632_v22 = vsel %vm41_vm0, %v623_v29, %v625_v16  ;;  %v758_v6 = vrot.slane %v738_v48, %v1301_v8  ;;  %v713_v61 = vrot.slane %v693_v33, %v1287_v0 }
 0x2fb   :  { %v670_v24 = vmul.f32 %v657_v62, %v632_v22  ;;  %v671_v21 = vmul.f32 %v661_v2, %v631_v20  ;;  %v717_v62 = vrot.slane %v697_v50, %v1287_v0  ;;  %v766_v11 = vrot.slane %v746_v53, %v1301_v8 }
 0x2fc   :  { %v770_v63 = vrot.slane %v750_v54, %v1301_v8  ;;  %v818_v14 = vrot.slane %v798_v57, %v1303_v10  ;;  %v822_v16 = vrot.slane %v802_v3, %v1303_v10  ;;  %v862_v60 = vrot.slane %v1410_v45, %v1327_v27 }
 0x2fd   :  { %v674_v30 = vadd.f32 %v670_v24, %v618_v23  ;;  %v1375_v34 = vadd.f32 %v671_v21, %v619_v19  ;;  %v629_v35 = vpop.permute.xlu1 %628  ;;  %v854_v23 = vrot.slane %v1405_v43, %v1327_v27  ;;  %v858_v25 = vrot.slane %v1410_v45, %v1325_v26 }
 0x2fe   :  { %v630_v32 = vsel %vm41_vm0, %v627_v15, %v629_v35  ;;  %v633_v37 = vsel %vm41_vm0, %v629_v35, %v623_v29  ;;  %v814_v15 = vrot.slane %v794_v58, %v1303_v10  ;;  %v882_v45 = vrot.slane %v862_v60, %v1325_v26  ;;  %v974_v60 = vld [vmem:[%s1498_s0 + $0x8] sm:$0xff] }
 0x2ff   :  { %v672_v39 = vmul.f32 %v665_v9, %v630_v32  ;;  %v673_v40 = vmul.f32 %v669_v17, %v633_v37  ;;  %722 = vrot.lane.b32.xlu0 %v674_v30, %s988_s4  ;;  %724 = vrot.lane.b32.xlu1 %v1375_v34, %s988_s4  ;;  %v718_v13 = vmul.f32 %v705_v55, %v674_v30 }
 0x300   :  { %v826_v17 = vrot.slane %v806_v31, %v1303_v10  ;;  %v719_v27 = vmul.f32 %v709_v56, %v1375_v34  ;;  %v874_v48 = vrot.slane %v854_v23, %v1325_v26 }
 0x301   :  { %v1382_v41 = vadd.f32 %v672_v39, %v620_v36  ;;  %v1384_v42 = vadd.f32 %v673_v40, %v621_v38 }
 0x303   :  { %728 = vrot.lane.b32.xlu1 %v1384_v42, %s988_s4  ;;  %726 = vrot.lane.b32.xlu0 %v1382_v41, %s988_s4  ;;  %v721_v32 = vmul.f32 %v717_v62, %v1384_v42  ;;  %v720_v37 = vmul.f32 %v713_v61, %v1382_v41 }
 0x307   :  { %781 = vrot.lane.b32.xlu1 %v1375_v34, %s982_s8  ;;  %779 = vrot.lane.b32.xlu0 %v674_v30, %s982_s8 }
 0x30b   :  { %785 = vrot.lane.b32.xlu1 %v1384_v42, %s982_s8  ;;  %783 = vrot.lane.b32.xlu0 %v1382_v41, %s982_s8 }
 0x30f   :  { %837 = vrot.lane.b32.xlu1 %v1375_v34, %s976_s26  ;;  %835 = vrot.lane.b32.xlu0 %v674_v30, %s976_s26  ;;  %v878_v34 = vrot.slane %v858_v25, %v1325_v26 }
 0x313   :  { %841 = vrot.lane.b32.xlu1 %v1384_v42, %s976_s26  ;;  %839 = vrot.lane.b32.xlu0 %v1382_v41, %s976_s26 }
 0x371   :  { %v725_v44 = vpop.permute.xlu1 %724  ;;  %v723_v29 = vpop.permute.xlu0 %722 }
 0x372   :  { %v733_v0 = vsel %vm730_vm13, %v723_v29, %v725_v44 }
 0x373   :  { %v772_v28 = vmul.f32 %v762_v12, %v733_v0 }
 0x375   :  { %v729_v49 = vpop.permute.xlu1 %728  ;;  %v727_v51 = vpop.permute.xlu0 %726 }
 0x376   :  { %v734_v7 = vsel %vm730_vm13, %v729_v49, %v723_v29  ;;  %v732_v9 = vsel %vm730_vm13, %v725_v44, %v727_v51  ;;  %v731_v8 = vsel %vm730_vm13, %v727_v51, %v729_v49  ;;  %v776_v49 = vadd.f32 %v772_v28, %v719_v27 }
 0x377   :  { %v771_v19 = vmul.f32 %v758_v6, %v734_v7  ;;  %v773_v30 = vmul.f32 %v766_v11, %v732_v9  ;;  %v774_v38 = vmul.f32 %v770_v63, %v731_v8 }
 0x379   :  { %v782_v2 = vpop.permute.xlu1 %781  ;;  %v780_v4 = vpop.permute.xlu0 %779  ;;  %v775_v39 = vadd.f32 %v771_v19, %v718_v13  ;;  %v777_v42 = vadd.f32 %v773_v30, %v720_v37  ;;  %v778_v50 = vadd.f32 %v774_v38, %v721_v32 }
 0x37a   :  { %v789_v24 = vsel %vm112_vm9, %v780_v4, %v782_v2 }
 0x37b   :  { %v828_v40 = vmul.f32 %v818_v14, %v789_v24 }
 0x37d   :  { %v786_v20 = vpop.permute.xlu1 %785  ;;  %v784_v22 = vpop.permute.xlu0 %783  ;;  %v832_v51 = vadd.f32 %v828_v40, %v776_v49 }
 0x37e   :  { %v790_v10 = vsel %vm112_vm9, %v786_v20, %v780_v4  ;;  %v788_v21 = vsel %vm112_vm9, %v782_v2, %v784_v22  ;;  %v787_v36 = vsel %vm112_vm9, %v784_v22, %v786_v20 }
 0x37f   :  { %v827_v35 = vmul.f32 %v814_v15, %v790_v10  ;;  %v829_v43 = vmul.f32 %v822_v16, %v788_v21  ;;  %v830_v46 = vmul.f32 %v826_v17, %v787_v36 }
 0x381   :  { %v838_v44 = vpop.permute.xlu1 %837  ;;  %v836_v29 = vpop.permute.xlu0 %835  ;;  %v831_v33 = vadd.f32 %v827_v35, %v775_v39  ;;  %v833_v52 = vadd.f32 %v829_v43, %v777_v42  ;;  %v834_v57 = vadd.f32 %v830_v46, %v778_v50 }
 0x382   :  { %v845_v47 = vsel %vm70_vm1, %v836_v29, %v838_v44 }
 0x383   :  { %v883_v41 = vmul.f32 %v870_v18, %v845_v47 }
 0x385   :  { %v887_v53 = vadd.f32 %v883_v41, %v831_v33  ;;  %v842_v54 = vpop.permute.xlu1 %841  ;;  %v840_v55 = vpop.permute.xlu0 %839 }
 0x386   :  { %v846_v58 = vsel %vm70_vm1, %v842_v54, %v836_v29  ;;  %v843_v3 = vsel %vm70_vm1, %v840_v55, %v842_v54  ;;  %v844_v26 = vsel %vm70_vm1, %v838_v44, %v840_v55 }
 0x387   :  { %v937_v56 = vmul.f32 -1.442695, %v887_v53  ;;  %v886_v31 = vmul.f32 %v882_v45, %v846_v58  ;;  %v884_v59 = vmul.f32 %v874_v48, %v844_v26  ;;  %v885_v6 = vmul.f32 %v878_v34, %v843_v3 }
 0x389   :  { %958 = vpow2.f32 %v937_v56  ;;  %v890_v61 = vadd.f32 %v886_v31, %v834_v57  ;;  %v888_v62 = vadd.f32 %v884_v59, %v832_v51  ;;  %v889_v2 = vadd.f32 %v885_v6, %v833_v52 }
 0x38b   :  { %v940_v4 = vmul.f32 -1.442695, %v890_v61  ;;  %v938_v12 = vmul.f32 -1.442695, %v888_v62  ;;  %v939_v7 = vmul.f32 -1.442695, %v889_v2 }
 0x38d   :  { %960 = vpow2.f32 %v940_v4 }
 0x38e   :  { %962 = vpow2.f32 %v938_v12 }
 0x38f   :  { %964 = vpow2.f32 %v939_v7 }
 0x396   :  { %v959_v11 = vpop.eup %958 }
 0x397   :  { %v903_v63 = vadd.f32 1.0, %v959_v11 }
 0x399   :  { %966 = vrcp.f32 %v903_v63 }
 0x39a   :  { %v961_v13 = vpop.eup %960 }
 0x39b   :  { %v963_v14 = vpop.eup %962  ;;  %v906_v5 = vadd.f32 1.0, %v961_v13 }
 0x39c   :  { %v965_v15 = vpop.eup %964  ;;  %v904_v16 = vadd.f32 1.0, %v963_v14 }
 0x39d   :  { %968 = vrcp.f32 %v906_v5  ;;  %v905_v0 = vadd.f32 1.0, %v965_v15 }
 0x39e   :  { %970 = vrcp.f32 %v904_v16 }
 0x39f   :  { %972 = vrcp.f32 %v905_v0 }
 0x3a6   :  { %v967_v9 = vpop.eup %966 }
 0x3aa   :  { %v969_v17 = vpop.eup %968 }
 0x3ab   :  { %v971_v18 = vpop.eup %970 }
 0x3ac   :  { %v973_v19 = vpop.eup %972  ;;  %v919_v8 = vcombine.low %v967_v9, %v971_v18 }
 0x3ad   :  { %v920_v20 = vcombine.low %v973_v19, %v969_v17 }
 0x3ae   :  { %v923_v22 = vmul.f32 %v919_v8, %v1030_v1 }
 0x3af   :  { %v924_v23 = vmul.f32 %v974_v60, %v920_v20 }
 0x3b0   :  { %925 = vst [vmem:[%s1504_s6] sm:$0xff] %v923_v22 }
 0x3b1   :  { %926 = vst [vmem:[%s1504_s6 + $0x8] sm:$0xff] %v924_v23 }

</bundles_post_ra>
